<compile_context>
chip_gen: v6e
topology: v6e:2x2x1
jax: 0.10.0
libtpu: 0.0.40
codegen_flags: <defaults>
</compile_context>

<pallas_src>
import functools

import jax
import jax.numpy as jnp
from jax.experimental import pallas as pl
from jax.experimental.pallas import tpu as pltpu


_LANE = 128


def _round_up(x: int, m: int) -> int:
    return (x + m - 1) // m * m


def _sublane_multiple(dtype) -> int:
    # Full-vreg sublane packing: 8 rows for 4-byte dtypes, 16 for bf16,
    # 32 for 1-byte (int8 / fp8).
    return max(8, 32 // jnp.dtype(dtype).itemsize)


def _chip_profile():
    """Returns (num_tensorcores, vmem_tile_budget_bytes, scoped_vmem_limit_bytes)."""
    kind = ""
    try:
        kind = jax.devices()[0].device_kind.lower()
    except Exception:
        pass
    if "v7" in kind:
        # v7x: 2 TCs per chip, only 64 MiB VMEM per TC.  Keep the tile budget
        # small so the f32 intermediates have real slack under the 48 MiB
        # scoped limit (no spills / compile failures on the largest tiles).
        return 2, 24 * 1024 * 1024, 48 * 1024 * 1024
    # v5e / v6e: single TC, 128 MiB VMEM.  Big tiles -> HBM roofline
    # (measured elementwise kernels climb toward ~86% only at large tiles).
    return 1, 64 * 1024 * 1024, 100 * 1024 * 1024


def _choose_rows_per_tile(rows: int, hidden: int, dtype, num_tc: int,
                          vmem_budget: int) -> int:
    sub = _sublane_multiple(dtype)
    itemsize = jnp.dtype(dtype).itemsize
    hidden_p = _round_up(hidden, _LANE)  # intermediates occupy lane-padded vregs
    # Double-buffered in+out tiles (native dtype) + ~2 f32 copies per element.
    bytes_per_row = 4 * hidden_p * itemsize + 8 * hidden_p
    rows_per_tile = max(sub, (vmem_budget // bytes_per_row) // sub * sub)
    rows_aligned = _round_up(rows, sub)
    rows_per_tile = min(rows_per_tile, rows_aligned)

    if num_tc >= 2 and rows_aligned > sub:
        # Megacore (v7x): aim for an even tile count, ideally >= 2 tiles per
        # core, so the "parallel" axis splits without load imbalance and each
        # core keeps i+1-prefetch / i-1-writeback overlap.
        num_tiles = pl.cdiv(rows, rows_per_tile)
        min_tiles = 2 * num_tc if rows_aligned >= 2 * num_tc * sub else num_tc
        target = max(num_tiles, min_tiles)
        if target % num_tc:
            target += num_tc - (target % num_tc)
        rows_per_tile = min(rows_per_tile,
                            _round_up(pl.cdiv(rows_aligned, target), sub))
    return rows_per_tile


def _rmsnorm_kernel(x_ref, scale_ref, o_ref, *, eps: float, inv_hidden: float):
    # x_ref:     (rows_tile, hidden)  in VMEM
    # scale_ref: (1, hidden) f32      in VMEM (constant index_map -> DMA'd once)
    # o_ref:     (rows_tile, hidden)  in VMEM
    x = x_ref[...].astype(jnp.float32)
    norm_x = jnp.sum(x * x, axis=-1, keepdims=True) * inv_hidden
    x_normed = x * jax.lax.rsqrt(norm_x + eps)           # rsqrt -> EUP (free slot)
    o_ref[...] = (scale_ref[...] * x_normed).astype(o_ref.dtype)


def rmsnorm(x: jax.Array, scale: jax.Array, eps: float = 1e-5) -> jax.Array:
    """RMSNorm over the last axis of x. scale has shape (hidden,)."""
    orig_shape = x.shape
    hidden = orig_shape[-1]
    rows = 1
    for d in orig_shape[:-1]:
        rows *= d

    num_tc, vmem_budget, vmem_limit = _chip_profile()
    rows_per_tile = _choose_rows_per_tile(rows, hidden, x.dtype, num_tc, vmem_budget)
    num_tiles = pl.cdiv(rows, rows_per_tile)

    # Collapsing leading dims is layout-preserving (free).  No padding copies:
    # the hidden block equals the full array dim and the partial last row
    # block is handled by Pallas (OOB stores dropped).
    x2d = x.reshape(rows, hidden)
    scale2d = scale.reshape(1, hidden).astype(jnp.float32)

    kernel = functools.partial(_rmsnorm_kernel, eps=eps, inv_hidden=1.0 / hidden)

    out2d = pl.pallas_call(
        kernel,
        out_shape=jax.ShapeDtypeStruct((rows, hidden), x.dtype),
        grid=(num_tiles,),
        in_specs=[
            pl.BlockSpec((rows_per_tile, hidden), lambda i: (i, 0)),
            pl.BlockSpec((1, hidden), lambda i: (0, 0)),
        ],
        out_specs=pl.BlockSpec((rows_per_tile, hidden), lambda i: (i, 0)),
        compiler_params=pltpu.CompilerParams(
            dimension_semantics=("parallel",),
            vmem_limit_bytes=vmem_limit,
        ),
    )(x2d, scale2d)

    return out2d.reshape(orig_shape)


if __name__ == "__main__":
    # Deterministic small example: batch=2, seq=8, hidden=32
    batch, seq, hidden = 2, 8, 32
    key = jax.random.PRNGKey(0)
    x = jax.random.normal(key, (batch, seq, hidden), dtype=jnp.float32)

    # nn.Parameter(torch.ones(size)) -> scale initialized to ones
    scale = jnp.ones((hidden,), dtype=jnp.float32)
    eps = 1e-5

    out = rmsnorm(x, scale, eps)
    jax.block_until_ready(out)

    # Reference check in plain JAX (same math as the PyTorch module)
    norm_x = jnp.mean(x * x, axis=-1, keepdims=True)
    ref = scale * (x * jax.lax.rsqrt(norm_x + eps))
    assert out.shape == x.shape
    assert jnp.allclose(out, ref, atol=1e-5, rtol=1e-5)

    # Larger bf16 shape with rows not a multiple of the sublane packing (231
    # rows, bf16 sub=16) to exercise the implicit partial-last-block path, and
    # a 128-multiple hidden to exercise the lane-dense store path.
    xb = jax.random.normal(jax.random.PRNGKey(1), (3, 77, 256)).astype(jnp.bfloat16)
    sb = jnp.ones((256,), dtype=jnp.float32)
    ob = rmsnorm(xb, sb, eps)
    jax.block_until_ready(ob)
    xf = xb.astype(jnp.float32)
    refb = sb * (xf * jax.lax.rsqrt(jnp.mean(xf * xf, axis=-1, keepdims=True) + eps))
    assert ob.shape == xb.shape
    assert jnp.allclose(ob.astype(jnp.float32), refb, atol=2e-2, rtol=2e-2)

    print("KERNEL_OK")
</pallas_src>

<mosaic_0001>
module attributes {stable_mosaic.version = 11 : i64} {
  func.func @_rmsnorm_kernel(%arg0: i32, %arg1: memref<16x32xf32, #tpu.memory_space<vmem>>, %arg2: memref<1x32xf32, #tpu.memory_space<vmem>>, %arg3: memref<16x32xf32, #tpu.memory_space<vmem>>) attributes {dimension_semantics = [#tpu.dimension_semantics<parallel>], iteration_bounds = array<i64: 1>, scalar_prefetch = 0 : i64, scratch_operands = 0 : i64, tpu.core_type = #tpu.core_type<tc>, window_params = [{transform_indices = @transform_0, window_bounds = array<i64: 16, 32>}, {pipeline_mode = #tpu.pipeline_mode<synchronous>, transform_indices = @transform_1, window_bounds = array<i64: 1, 32>}, {transform_indices = @transform_2, window_bounds = array<i64: 16, 32>}]} {
    %c0 = arith.constant 0 : index
    %c0_0 = arith.constant 0 : index
    %0 = vector.load %arg1[%c0, %c0_0] : memref<16x32xf32, #tpu.memory_space<vmem>>, vector<16x32xf32>
    %1 = arith.mulf %0, %0 : vector<16x32xf32>
    %cst = arith.constant dense<0.000000e+00> : vector<16xf32>
    %2 = vector.multi_reduction <add>, %1, %cst [1] : vector<16x32xf32> to vector<16xf32>
    %3 = vector.shape_cast %2 : vector<16xf32> to vector<16x1xf32>
    %cst_1 = arith.constant 3.125000e-02 : f32
    %4 = vector.broadcast %cst_1 : f32 to vector<16x1xf32>
    %5 = arith.mulf %3, %4 : vector<16x1xf32>
    %cst_2 = arith.constant 9.99999974E-6 : f32
    %6 = vector.broadcast %cst_2 : f32 to vector<16x1xf32>
    %7 = arith.addf %5, %6 : vector<16x1xf32>
    %8 = math.rsqrt %7 : vector<16x1xf32>
    %9 = vector.broadcast %8 : vector<16x1xf32> to vector<16x32xf32>
    %10 = arith.mulf %0, %9 : vector<16x32xf32>
    %c0_3 = arith.constant 0 : index
    %c0_4 = arith.constant 0 : index
    %11 = vector.load %arg2[%c0_3, %c0_4] : memref<1x32xf32, #tpu.memory_space<vmem>>, vector<1x32xf32>
    %12 = vector.broadcast %11 : vector<1x32xf32> to vector<16x32xf32>
    %13 = arith.mulf %12, %10 : vector<16x32xf32>
    %c0_5 = arith.constant 0 : index
    %c0_6 = arith.constant 0 : index
    %14 = vector.load %arg3[%c0_5, %c0_6] : memref<16x32xf32, #tpu.memory_space<vmem>>, vector<16x32xf32>
    tpu.vector_store %arg3[%c0_5, %c0_6], %13 {strides = array<i32>} : memref<16x32xf32, #tpu.memory_space<vmem>>, vector<16x32xf32>,
    return
  }
  func.func @transform_0(%arg0: i32) -> (i32, i32) {
    %c0_i32 = arith.constant 0 : i32
    %c0_i32_0 = arith.constant 0 : i32
    return %arg0, %c0_i32 : i32, i32
  }
  func.func @transform_1(%arg0: i32) -> (i32, i32) {
    %c0_i32 = arith.constant 0 : i32
    %c0_i32_0 = arith.constant 0 : i32
    %c0_i32_1 = arith.constant 0 : i32
    return %c0_i32, %c0_i32_0 : i32, i32
  }
  func.func @transform_2(%arg0: i32) -> (i32, i32) {
    %c0_i32 = arith.constant 0 : i32
    %c0_i32_0 = arith.constant 0 : i32
    return %arg0, %c0_i32 : i32, i32
  }
}

</mosaic_0001>

<bundles_post_ra>
// kernel: tpu_custom_call.1
= control target key start
LH: loop header
LB: loop body
LE: loop exit
PB: predicated region body
PF: predicated region fallthrough
CT: control target
= control target key end

     0   :  { %7 = vsyncpa [#allocation3], 0  ;;  %s164_s0 = inlined_call_operand.hbm [shape: f32[16,32], index: 0, kind: input, shape index: {}]   ;;  %s165_s1 = inlined_call_operand.vmem [shape: f32[1,32], index: 1, kind: input, shape index: {}]   ;;  %s166_s2 = inlined_call_operand.hbm [shape: f32[16,32], index: 2, kind: output, shape index: {}]  }
   0x1   :  { %8 = vsyncpa [#allocation4], 0  ;;  %s126_s9 = smov [#allocation2]  }
   0x2   :  { %s14_s10 = sshll.u32 %s126_s9, 4  ;;  %s15_s10 = int_to_ptr.vmem [resolvable:$true] %s14_s10 }
   0x3   :  { %s90_s11 = scalar_lea.vmem %s15_s10, 256  ;;  %p95_p1 = scmp.lt.s32.totalorder %s15_s10, %s15_s10 }
   0x4   :  { %p91_p0 = scmp.ne.s32.totalorder %s15_s10, %s90_s11  ;;  %p96_p2 = scmp.lt.s32.totalorder %s90_s11, %s90_s11 }
   0x6   :  { %p97_p3 = por %p96_p2, %p95_p1 }
   0x8   :  { %p98_p4 = pnand %p97_p3, %p91_p0 }
   0xa   :  { %101 = shalt.err (!%p98_p4)
}
   0xb   :  { %s127_s12 = smov 128   ;;  %s128_s13 = smov 8  }
   0xc   :  { %20 = dma.hbm_to_vmem [thread:$0]  %s164_s0, 256, %s15_s10, [#allocation3], %s127_s12, %s127_s12, %s128_s13  }
   0xd   :  { %122 = dma.done.wait [#allocation3], 256  }
   0xe   :  { %123 = vsyncadd [#allocation3], 4294967040  ;;  %v26_v0 = vld [vmem:[#allocation2] sm:$0xff]  ;;  %vm30_vm0 = vcmask 261120   ;;  %v27_v1 = vld [vmem:[#allocation2 + $0x8] sm:$0xff]  ;;  %s129_s17 = smov [#allocation5]  }
   0xf   :  { %v28_v2 = vmul.f32 %v26_v0, %v26_v0  ;;  %v29_v3 = vmul.f32 %v27_v1, %v27_v1  ;;  %v73_v13 = vld [vmem:[%s165_s1] ss:$0 sm:$0xff]  ;;  %s61_s18 = sshll.u32 %s129_s17, 4  ;;  %s62_s18 = int_to_ptr.vmem [resolvable:$true] %s61_s18 }
  0x10   :  { %s102_s19 = scalar_lea.vmem %s62_s18, 256  ;;  %p107_p6 = scmp.lt.s32.totalorder %s62_s18, %s62_s18 }
  0x11   :  { %v31_v4 = vsel %vm30_vm0, %v28_v2, 0.0  ;;  %v34_v5 = vsel %vm30_vm0, %v29_v3, 0.0  ;;  %p103_p5 = scmp.ne.s32.totalorder %s62_s18, %s102_s19  ;;  %p108_p7 = scmp.lt.s32.totalorder %s102_s19, %s102_s19 }
  0x12   :  { %32 = vadd.xlane.f32.xlu0 %v31_v4 }
  0x13   :  { %p109_p8 = por %p108_p7, %p107_p6 }
  0x15   :  { %p110_p9 = pnand %p109_p8, %p103_p5 }
  0x16   :  { %35 = vadd.xlane.f32.xlu0 %v34_v5 }
  0x9b   :  { %v33_v6 = vpop.xlane.xlu0 %32 }
  0x9c   :  { %v37_v7 = vmul.f32 0.03125, %v33_v6 }
  0x9e   :  { %v39_v8 = vadd.f32 1e-05, %v37_v7 }
  0x9f   :  { %v36_v9 = vpop.xlane.xlu0 %35 }
  0xa0   :  { %78 = vrsqrt.f32 %v39_v8  ;;  %v38_v10 = vmul.f32 0.03125, %v36_v9 }
  0xa2   :  { %v40_v11 = vadd.f32 1e-05, %v38_v10 }
  0xa4   :  { %80 = vrsqrt.f32 %v40_v11 }
  0xad   :  { %v79_v12 = vpop.eup %78 }
  0xae   :  { %v43_v14 = vmul.f32 %v79_v12, %v26_v0 }
  0xb0   :  { %v52_v15 = vmul.f32 %v73_v13, %v43_v14 }
  0xb1   :  { %v81_v16 = vpop.eup %80 }
  0xb2   :  { %v44_v17 = vmul.f32 %v81_v16, %v27_v1  ;;  %54 = vst.msk [vmem:[#allocation5] sm:$0xff] %vm30_vm0, %v52_v15 }
  0xb4   :  { %v53_v18 = vmul.f32 %v73_v13, %v44_v17 }
  0xb6   :  { %55 = vst.msk [vmem:[#allocation5 + $0x8] sm:$0xff] %vm30_vm0, %v53_v18 }
  0xb7   :  { %113 = shalt.err (!%p110_p9)
}
  0xb8   :  { %67 = dma.vmem_to_hbm [thread:$0]  %s62_s18, 256, %s166_s2, [#allocation4], %s127_s12, %s127_s12, %s128_s13  }
  0xb9   :  { %124 = dma.done.wait [#allocation4], 256  }
  0xba   :  { %125 = vsyncadd [#allocation4], 4294967040 }
  0xbb   :  { %71 = vsyncpa [#allocation3], 1 }
  0xbc   :  { %72 = vsyncpa [#allocation4], 1 }

</bundles_post_ra>
